<compile_context>
chip_gen: v6e
topology: v6e:2x2x1
jax: 0.10.0
libtpu: 0.0.40
codegen_flags: <defaults>
</compile_context>

<pallas_src>
import math

import jax
import jax.numpy as jnp
from jax.experimental import pallas as pl
from jax.experimental.pallas import tpu as pltpu


def _round_up(x: int, m: int) -> int:
    return ((x + m - 1) // m) * m


# ---------------------------------------------------------------------------
# Kernel 1: feature transform  support = X @ W  (computed once, tiled over rows)
# ---------------------------------------------------------------------------
def _support_kernel(x_ref, w_ref, o_ref):
    o_ref[...] = jnp.dot(
        x_ref[...], w_ref[...], preferred_element_type=jnp.float32
    ).astype(o_ref.dtype)


# ---------------------------------------------------------------------------
# Kernel 2: neighborhood aggregation  out = adj @ support + bias
#   grid = (row tiles ["parallel"], K tiles ["arbitrary" reduction])
# ---------------------------------------------------------------------------
def _aggregate_kernel(adj_ref, s_ref, b_ref, o_ref, acc_ref):
    k = pl.program_id(1)

    @pl.when(k == 0)
    def _():
        acc_ref[...] = jnp.zeros_like(acc_ref)

    acc_ref[...] += jnp.dot(
        adj_ref[...], s_ref[...], preferred_element_type=jnp.float32
    )

    @pl.when(k == pl.num_programs(1) - 1)
    def _():
        # bias added once, at finalize
        o_ref[...] = (acc_ref[...] + b_ref[...]).astype(o_ref.dtype)


def gcn_forward(x, adj, weight, bias=None, *, tile_rows=256, tile_k=512,
                compute_dtype=jnp.bfloat16):
    """GraphConvolution forward: adj @ (x @ weight) + bias."""
    N, f_in = x.shape
    assert weight.shape[0] == f_in
    f_out = weight.shape[1]
    out_dtype = x.dtype
    out_itemsize = jnp.dtype(out_dtype).itemsize
    c_itemsize = jnp.dtype(compute_dtype).itemsize

    # Lane-dense output: pad f_out up to a multiple of 128.
    f_out_p = _round_up(f_out, 128)

    # Bounded, (8,128)-aligned tiles; pad N independently along rows / K so the
    # tiles divide evenly.
    tile_rows = min(tile_rows, _round_up(N, 8))       # multiple of 8
    tile_k = min(tile_k, _round_up(N, 128))           # multiple of 128
    n_rows_p = _round_up(N, tile_rows)                # padded output rows
    n_k_p = _round_up(N, tile_k)                      # padded contraction dim

    # Pad + cast inputs (zero padding keeps the math exact; padding sliced off).
    x_p = jnp.pad(x.astype(compute_dtype), ((0, n_k_p - N), (0, 0)))
    adj_p = jnp.pad(adj.astype(compute_dtype), ((0, n_rows_p - N), (0, n_k_p - N)))
    w_p = jnp.pad(weight.astype(compute_dtype), ((0, 0), (0, f_out_p - f_out)))
    b = bias if bias is not None else jnp.zeros((f_out,), jnp.float32)
    b_p = jnp.pad(b.astype(jnp.float32), (0, f_out_p - f_out)).reshape(1, f_out_p)

    # ---- support = X @ W (once) -------------------------------------------
    support = pl.pallas_call(
        _support_kernel,
        out_shape=jax.ShapeDtypeStruct((n_k_p, f_out_p), compute_dtype),
        grid_spec=pltpu.PrefetchScalarGridSpec(
            num_scalar_prefetch=0,
            grid=(n_k_p // tile_k,),
            in_specs=[
                pl.BlockSpec((tile_k, f_in), lambda i: (i, 0)),
                pl.BlockSpec((f_in, f_out_p), lambda i: (0, 0)),
            ],
            out_specs=pl.BlockSpec((tile_k, f_out_p), lambda i: (i, 0)),
        ),
        compiler_params=pltpu.CompilerParams(
            dimension_semantics=("parallel",)),
        cost_estimate=pl.CostEstimate(
            flops=2 * n_k_p * f_in * f_out_p,
            transcendentals=0,
            bytes_accessed=(n_k_p * f_in * c_itemsize
                            + f_in * f_out_p * c_itemsize
                            + n_k_p * f_out_p * c_itemsize)),
    )(x_p, w_p)

    # ---- out = adj @ support + bias ---------------------------------------
    out_p = pl.pallas_call(
        _aggregate_kernel,
        out_shape=jax.ShapeDtypeStruct((n_rows_p, f_out_p), out_dtype),
        grid_spec=pltpu.PrefetchScalarGridSpec(
            num_scalar_prefetch=0,
            grid=(n_rows_p // tile_rows, n_k_p // tile_k),
            in_specs=[
                pl.BlockSpec((tile_rows, tile_k), lambda i, k: (i, k)),
                pl.BlockSpec((tile_k, f_out_p), lambda i, k: (k, 0)),
                pl.BlockSpec((1, f_out_p), lambda i, k: (0, 0)),
            ],
            out_specs=pl.BlockSpec((tile_rows, f_out_p), lambda i, k: (i, 0)),
            scratch_shapes=[pltpu.VMEM((tile_rows, f_out_p), jnp.float32)],
        ),
        compiler_params=pltpu.CompilerParams(
            dimension_semantics=("parallel", "arbitrary")),
        cost_estimate=pl.CostEstimate(
            flops=2 * n_rows_p * n_k_p * f_out_p,
            transcendentals=0,
            bytes_accessed=(n_rows_p * n_k_p * c_itemsize
                            + n_k_p * f_out_p * c_itemsize
                            + n_rows_p * f_out_p * out_itemsize)),
    )(adj_p, support, b_p)

    return out_p[:N, :f_out]


# ---------------------------------------------------------------------------
# Self-test
# ---------------------------------------------------------------------------
def _make_inputs(key, N, f_in, f_out):
    k_x, k_a, k_w, k_b = jax.random.split(key, 4)
    stdv = 1.0 / math.sqrt(f_out)  # matches reset_parameters()
    weight = jax.random.uniform(k_w, (f_in, f_out), jnp.float32,
                                minval=-stdv, maxval=stdv)
    bias = jax.random.uniform(k_b, (f_out,), jnp.float32,
                              minval=-stdv, maxval=stdv)
    x = jax.random.normal(k_x, (N, f_in), jnp.float32)
    adj_raw = jax.random.uniform(k_a, (N, N), jnp.float32)
    adj = adj_raw / jnp.sum(adj_raw, axis=1, keepdims=True)
    return x, adj, weight, bias


def _check(out, x, adj, weight, bias):
    f32 = jnp.float32
    # Reference along the exact bf16 compute path (bf16 operands, f32 accum).
    adj_b = adj.astype(jnp.bfloat16).astype(f32)
    sup_b = (x.astype(jnp.bfloat16).astype(f32)
             @ weight.astype(jnp.bfloat16).astype(f32)).astype(jnp.bfloat16).astype(f32)
    ref_b = adj_b @ sup_b + bias
    # Pure f32 reference (semantic sanity, looser tolerance for bf16 rounding).
    ref_f = adj @ (x @ weight) + bias
    out32 = out.astype(f32)
    assert out.shape == ref_f.shape
    assert jnp.allclose(out32, ref_b, atol=1e-2, rtol=1e-2), "mismatch vs bf16-path ref"
    assert jnp.allclose(out32, ref_f, atol=5e-2, rtol=5e-2), "mismatch vs f32 ref"


if __name__ == "__main__":
    key = jax.random.PRNGKey(0)
    k1, k2 = jax.random.split(key)

    # Test 1: small shapes consistent with the module (single-tile path).
    N, f_in, f_out = 128, 64, 32
    x, adj, weight, bias = _make_inputs(k1, N, f_in, f_out)
    out = jax.block_until_ready(gcn_forward(x, adj, weight, bias))
    _check(out, x, adj, weight, bias)

    # Test 2: exercises row/K multi-step grid, accumulator, and row/col padding
    # (N not a multiple of the tile, f_out padded 200 -> 256).
    N2, f_in2, f_out2 = 200, 96, 200
    x2, adj2, weight2, bias2 = _make_inputs(k2, N2, f_in2, f_out2)
    out2 = jax.block_until_ready(
        gcn_forward(x2, adj2, weight2, bias2, tile_rows=128, tile_k=128))
    _check(out2, x2, adj2, weight2, bias2)

    print("KERNEL_OK")
</pallas_src>

<mosaic_0001>
module attributes {stable_mosaic.version = 11 : i64} {
  func.func @_support_kernel(%arg0: i32, %arg1: memref<128x64xbf16, #tpu.memory_space<vmem>>, %arg2: memref<64x128xbf16, #tpu.memory_space<vmem>>, %arg3: memref<128x128xbf16, #tpu.memory_space<vmem>>) attributes {dimension_semantics = [#tpu.dimension_semantics<parallel>], iteration_bounds = array<i64: 1>, scalar_prefetch = 0 : i64, scratch_operands = 0 : i64, tpu.core_type = #tpu.core_type<tc>, window_params = [{transform_indices = @transform_0, window_bounds = array<i64: 128, 64>}, {pipeline_mode = #tpu.pipeline_mode<synchronous>, transform_indices = @transform_1, window_bounds = array<i64: 64, 128>}, {transform_indices = @transform_2, window_bounds = array<i64: 128, 128>}]} {
    %c0 = arith.constant 0 : index
    %c0_0 = arith.constant 0 : index
    %0 = vector.load %arg1[%c0, %c0_0] : memref<128x64xbf16, #tpu.memory_space<vmem>>, vector<128x64xbf16>
    %c0_1 = arith.constant 0 : index
    %c0_2 = arith.constant 0 : index
    %1 = vector.load %arg2[%c0_1, %c0_2] : memref<64x128xbf16, #tpu.memory_space<vmem>>, vector<64x128xbf16>
    %cst = arith.constant dense<0.000000e+00> : vector<128x128xf32>
    %2 = tpu.matmul %0, %1, %cst {dimension_numbers = #tpu.dot_dimension_numbers<[1], [0], [0], [1], [0, 0, 1, 1], [], []>} : vector<128x64xbf16>, vector<64x128xbf16>, vector<128x128xf32> -> vector<128x128xf32>
    %3 = arith.truncf %2 : vector<128x128xf32> to vector<128x128xbf16>
    %c0_3 = arith.constant 0 : index
    %c0_4 = arith.constant 0 : index
    %4 = vector.load %arg3[%c0_3, %c0_4] : memref<128x128xbf16, #tpu.memory_space<vmem>>, vector<128x128xbf16>
    tpu.vector_store %arg3[%c0_3, %c0_4], %3 {strides = array<i32>} : memref<128x128xbf16, #tpu.memory_space<vmem>>, vector<128x128xbf16>,
    return
  }
  func.func @transform_0(%arg0: i32) -> (i32, i32) {
    %c0_i32 = arith.constant 0 : i32
    %c0_i32_0 = arith.constant 0 : i32
    return %arg0, %c0_i32 : i32, i32
  }
  func.func @transform_1(%arg0: i32) -> (i32, i32) {
    %c0_i32 = arith.constant 0 : i32
    %c0_i32_0 = arith.constant 0 : i32
    %c0_i32_1 = arith.constant 0 : i32
    return %c0_i32, %c0_i32_0 : i32, i32
  }
  func.func @transform_2(%arg0: i32) -> (i32, i32) {
    %c0_i32 = arith.constant 0 : i32
    %c0_i32_0 = arith.constant 0 : i32
    return %arg0, %c0_i32 : i32, i32
  }
}

</mosaic_0001>

<bundles_post_ra>
// kernel: tpu_custom_call.1
= control target key start
LH: loop header
LB: loop body
LE: loop exit
PB: predicated region body
PF: predicated region fallthrough
CT: control target
= control target key end

     0   :  { %vm101_vm0 = vcmask 523264   ;;  %s564_s0 = inlined_call_operand.vmem [shape: bf16[128,64], index: 0, kind: input, shape index: {}]   ;;  %s565_s1 = inlined_call_operand.vmem [shape: bf16[64,128], index: 1, kind: input, shape index: {}]   ;;  %s566_s2 = inlined_call_operand.hbm [shape: bf16[128,128], index: 2, kind: output, shape index: {}]  }
   0x1   :  { %v465_v0 = vld [vmem:[%s565_s1 + $0x18] sm:$0xff]   ;;  %v466_v1 = vld [vmem:[%s565_s1 + $0x10] sm:$0xff]   ;;  %v467_v2 = vld [vmem:[%s565_s1 + $0x8] sm:$0xff]  }
   0x2   :  { %430 = vmatprep.subr.bf16.mxu0 %v465_v0  ;;  %454 = vmatprep.subr.bf16.mxu1 %v465_v0  ;;  %v469_v3 = vld [vmem:[%s564_s0] sm:$0xff]  }
   0x3   :  { %431 = vmatpush3.bf16.msra.mxu0 %v465_v0  ;;  %458 = vmatpush3.bf16.msra.mxu1 %v465_v0  ;;  %v470_v4 = vld [vmem:[%s564_s0 + $0x20] sm:$0xff]  }
   0x4   :  { %432 = vmatprep.subr.bf16.mxu0 %v466_v1  ;;  %455 = vmatprep.subr.bf16.mxu1 %v466_v1  ;;  %v468_v5 = vld [vmem:[%s565_s1] sm:$0xff]  }
   0x5   :  { %438 = vmatprep.mubr.msk.bf16.mxu0 %vm101_vm0, %v469_v3  ;;  %446 = vmatprep.mubr.msk.bf16.mxu1 %vm101_vm0, %v470_v4 }
   0x7   :  { %433 = vmatpush3.bf16.msra.mxu0 %v466_v1  ;;  %459 = vmatpush3.bf16.msra.mxu1 %v466_v1 }
   0x8   :  { %434 = vmatprep.subr.bf16.mxu0 %v467_v2  ;;  %456 = vmatprep.subr.bf16.mxu1 %v467_v2 }
   0xb   :  { %435 = vmatpush3.bf16.msra.mxu0 %v467_v2  ;;  %460 = vmatpush3.bf16.msra.mxu1 %v467_v2 }
   0xc   :  { %436 = vmatprep.subr.bf16.mxu0 %v468_v5  ;;  %457 = vmatprep.subr.bf16.mxu1 %v468_v5 }
   0xd   :  { %7 = vsyncpa [#allocation3], 0  ;;  %v471_v6 = vld [vmem:[%s564_s0 + $0x8] sm:$0xff]   ;;  %v473_v8 = vld [vmem:[%s564_s0 + $0x10] sm:$0xff]  }
   0xe   :  { %v472_v7 = vld [vmem:[%s564_s0 + $0x28] sm:$0xff]   ;;  %v474_v9 = vld [vmem:[%s564_s0 + $0x30] sm:$0xff]   ;;  %v475_v10 = vld [vmem:[%s564_s0 + $0x18] sm:$0xff]  }
   0xf   :  { %437 = vmatpush3.bf16.msra.mxu0 %v468_v5  ;;  %461 = vmatpush3.bf16.msra.mxu1 %v468_v5  ;;  %v476_v11 = vld [vmem:[%s564_s0 + $0x38] sm:$0xff]   ;;  %s499_s0 = smov [#allocation2]  }
  0x10   :  { %s308_s4 = sshll.u32 %s499_s0, 4  ;;  %s309_s4 = int_to_ptr.vmem [resolvable:$true] %s308_s4 }
  0x11   :  { %s477_s5 = scalar_lea.vmem %s309_s4, 1024  ;;  %p482_p1 = scmp.lt.s32.totalorder %s309_s4, %s309_s4 }
  0x12   :  { %439 = vmatmul.mubr.msk.bf16.vlgmr.msra.gmra.mxu0 %vm101_vm0, %v471_v6  ;;  %447 = vmatmul.mubr.msk.bf16.vlgmr.msra.gmra.mxu1 %vm101_vm0, %v472_v7  ;;  %p478_p0 = scmp.ne.s32.totalorder %s309_s4, %s477_s5  ;;  %p483_p2 = scmp.lt.s32.totalorder %s477_s5, %s477_s5 }
  0x13   :  { %442 = vmatprep.mubr.msk.bf16.mxu0 %vm101_vm0, %v473_v8  ;;  %450 = vmatprep.mubr.msk.bf16.mxu1 %vm101_vm0, %v474_v9 }
  0x14   :  { %p484_p3 = por %p483_p2, %p482_p1 }
  0x16   :  { %p485_p4 = pnand %p484_p3, %p478_p0 }
  0x1a   :  { %443 = vmatmul.mubr.msk.bf16.gmra.mxu0 %vm101_vm0, %v475_v10  ;;  %451 = vmatmul.mubr.msk.bf16.gmra.mxu1 %vm101_vm0, %v476_v11 }
  0xd2   :  { %v440_v12 = vpop.f32.mrf.mxu0  ;;  %v448_v13 = vpop.f32.mrf.mxu1 }
  0xd4   :  { %v160_v14 = vpop.f32.mrf.mxu0  ;;  %v192_v15 = vpop.f32.mrf.mxu1 }
  0xd6   :  { %v441_v16 = vpop.f32.mrf.mxu0  ;;  %v449_v17 = vpop.f32.mrf.mxu1 }
  0xd7   :  { %v379_v18 = vpack.c.bf16 %v441_v16, %v440_v12  ;;  %v399_v19 = vpack.c.bf16 %v449_v17, %v448_v13 }
  0xd8   :  { %v163_v20 = vpop.f32.mrf.mxu0  ;;  %v195_v21 = vpop.f32.mrf.mxu1 }
  0xd9   :  { %411 = vst [vmem:[#allocation2 + $0x8] sm:$0xff] %v379_v18   ;;  %415 = vst [vmem:[#allocation2 + $0x28] sm:$0xff] %v399_v19   ;;  %v374_v22 = vpack.c.bf16 %v163_v20, %v160_v14  ;;  %v394_v23 = vpack.c.bf16 %v195_v21, %v192_v15 }
  0xda   :  { %v444_v24 = vpop.f32.mrf.mxu0  ;;  %v452_v25 = vpop.f32.mrf.mxu1 }
  0xdb   :  { %375 = vst [vmem:[#allocation2] sm:$0xff] %v374_v22   ;;  %414 = vst [vmem:[#allocation2 + $0x20] sm:$0xff] %v394_v23  }
  0xdc   :  { %v176_v26 = vpop.f32.mrf.mxu0  ;;  %v208_v27 = vpop.f32.mrf.mxu1 }
  0xde   :  { %v445_v28 = vpop.f32.mrf.mxu0  ;;  %v453_v29 = vpop.f32.mrf.mxu1 }
  0xdf   :  { %v389_v30 = vpack.c.bf16 %v445_v28, %v444_v24  ;;  %v409_v31 = vpack.c.bf16 %v453_v29, %v452_v25 }
  0xe0   :  { %v179_v32 = vpop.f32.mrf.mxu0  ;;  %v211_v33 = vpop.f32.mrf.mxu1 }
  0xe1   :  { %413 = vst [vmem:[#allocation2 + $0x18] sm:$0xff] %v389_v30   ;;  %417 = vst [vmem:[#allocation2 + $0x38] sm:$0xff] %v409_v31   ;;  %v384_v34 = vpack.c.bf16 %v179_v32, %v176_v26  ;;  %v404_v35 = vpack.c.bf16 %v211_v33, %v208_v27 }
  0xe3   :  { %412 = vst [vmem:[#allocation2 + $0x10] sm:$0xff] %v384_v34   ;;  %416 = vst [vmem:[#allocation2 + $0x30] sm:$0xff] %v404_v35  }
  0xe4   :  { %488 = shalt.err (!%p485_p4)
}
  0xe5   :  { %s500_s6 = smov 64   ;;  %s501_s7 = smov 4  }
  0xe6   :  { %314 = dma.vmem_to_hbm [thread:$0]  %s309_s4, 1024, %s566_s2, [#allocation3], %s500_s6, %s500_s6, %s501_s7  }
  0xe7   :  { %497 = dma.done.wait [#allocation3], 1024  }
  0xe8   :  { %498 = vsyncadd [#allocation3], 4294966272 }
  0xe9   :  { %318 = vsyncpa [#allocation3], 1 }

</bundles_post_ra>
